<compile_context>
chip_gen: v6e
topology: v6e:2x2x1
jax: 0.10.0
libtpu: 0.0.40
codegen_flags: <defaults>
</compile_context>

<pallas_src>
import jax
import jax.numpy as jnp
from jax.experimental import pallas as pl
from jax.experimental.pallas import tpu as pltpu

_LANE = 128
_SUBLANE = 8
_NEG_BIG = -1e30  # padded-logit bias: exp(-1e30 - m) == 0.0 in f32, no NaNs


def _round_up(n, m):
    return (n + m - 1) // m * m


def policy_kernel(x_ref, w1_ref, b1_ref, w2_ref, b2_ref, w3_ref, b3_ref, out_ref):
    # x tile: (TB, S) f32 -> bf16 for the MXU; all accumulation in f32.
    x = x_ref[...].astype(jnp.bfloat16)

    # dense1 + ReLU
    h1 = jnp.dot(x, w1_ref[...], preferred_element_type=jnp.float32) + b1_ref[...]
    h1 = jnp.maximum(h1, 0.0).astype(jnp.bfloat16)                    # (TB, H)

    # dense2 + ReLU
    h2 = jnp.dot(h1, w2_ref[...], preferred_element_type=jnp.float32) + b2_ref[...]
    h2 = jnp.maximum(h2, 0.0).astype(jnp.bfloat16)                    # (TB, H)

    # dense3 -> logits over the lane-padded action dim (padded columns carry bias -1e30)
    logits = jnp.dot(h2, w3_ref[...], preferred_element_type=jnp.float32) + b3_ref[...]

    # softmax over the (padded) action axis -- padded lanes contribute exp == 0.
    m = jnp.max(logits, axis=-1, keepdims=True)
    e = jnp.exp(logits - m)
    denom = jnp.sum(e, axis=-1, keepdims=True)
    # Exact normalization: approx reciprocal broke the sum-to-1 invariant (~1e-3 drift).
    out_ref[...] = (e / denom).astype(out_ref.dtype)


def policy_network_forward(state, kparams, action_size, *, block_b=1024):
    """state: (B, S) f32. kparams: bf16 weights in (in, out) layout, f32 biases, action
    dim pre-padded to a multiple of 128. Returns (B, action_size) f32 probabilities."""
    B, S = state.shape
    w1, b1 = kparams["w1"], kparams["b1"]
    w2, b2 = kparams["w2"], kparams["b2"]
    w3, b3 = kparams["w3"], kparams["b3"]
    H = w1.shape[1]
    A_pad = w3.shape[1]

    # Batch tile: as large as block_b allows (amortize ~0.35us/step grid overhead, keep
    # the MXU M-dim full), multiple of 16 so bf16 intermediates fill sublane pairs, but
    # capped so the grid keeps >= 2 steps for v7x's two TensorCores when B allows.
    TB = max(_SUBLANE, min(block_b, _round_up(B, _SUBLANE)))
    if TB >= 16:
        TB = _round_up(TB, 16)
    if B >= 32 and pl.cdiv(B, TB) < 2:
        TB = _round_up(pl.cdiv(B, 2), 16)
    grid = (pl.cdiv(B, TB),)   # partial last block is fine: all ops are row-local

    x_spec = pl.BlockSpec((TB, S), lambda i: (i, 0))
    out_spec = pl.BlockSpec((TB, A_pad), lambda i: (i, 0))
    const = lambda shape: pl.BlockSpec(shape, lambda i: (0, 0))  # grid-invariant, VMEM-resident

    weight_bytes = sum(int(v.size) * v.dtype.itemsize for v in (w1, b1, w2, b2, w3, b3))

    # Advisory cost for XLA scheduling around the custom call.
    flops = 2 * B * (S * H + H * H + H * A_pad)
    bytes_accessed = (int(state.size) * state.dtype.itemsize
                      + weight_bytes
                      + B * A_pad * 2)                      # bf16 output slab
    cost = pl.CostEstimate(flops=int(flops),
                           transcendentals=int(B * A_pad),
                           bytes_accessed=int(bytes_accessed))

    # VMEM budget: resident weights (worst-case double-buffered) + double-buffered x/out
    # tiles + headroom; clamped to 16-32 MiB (well under v7x's 64 MiB per-TC physical VMEM).
    block_io_bytes = TB * S * state.dtype.itemsize + TB * A_pad * 2
    vmem_limit = int(min(max(2 * weight_bytes + 4 * block_io_bytes + (4 << 20), 16 << 20),
                         32 << 20))

    probs_pad = pl.pallas_call(
        policy_kernel,
        out_shape=jax.ShapeDtypeStruct((B, A_pad), jnp.bfloat16),  # bf16 halves writeback
        grid=grid,
        in_specs=[x_spec,
                  const(w1.shape), const(b1.shape),
                  const(w2.shape), const(b2.shape),
                  const(w3.shape), const(b3.shape)],
        out_specs=out_spec,
        compiler_params=pltpu.CompilerParams(
            dimension_semantics=("parallel",),
            vmem_limit_bytes=vmem_limit),
        cost_estimate=cost,
    )(state, w1, b1, w2, b2, w3, b3)

    # Slice the lane-padded slab to the real action count; return f32 like the module.
    return probs_pad[:, :action_size].astype(jnp.float32)


def init_params(key, state_size, action_size):
    """f32 params mimicking nn.Linear default init (uniform +/- 1/sqrt(fan_in)).
    Stored as (in, out) == transpose of PyTorch's (out, in)."""
    hidden = 8 * state_size
    dims = [(state_size, hidden), (hidden, hidden), (hidden, action_size)]
    params = {}
    for i, (fan_in, fan_out) in enumerate(dims, start=1):
        key, kw, kb = jax.random.split(key, 3)
        bound = 1.0 / jnp.sqrt(jnp.float32(fan_in))
        params[f"w{i}"] = jax.random.uniform(
            kw, (fan_in, fan_out), jnp.float32, minval=-bound, maxval=bound)
        params[f"b{i}"] = jax.random.uniform(
            kb, (1, fan_out), jnp.float32, minval=-bound, maxval=bound)
    return params


def prepare_kernel_params(params, action_size):
    """bf16 weights, f32 biases; pad the action (output) dim to a multiple of 128.
    Padded w3 columns are 0; padded b3 columns are -1e30 so softmax is unaffected."""
    A_pad = max(_LANE, _round_up(action_size, _LANE))
    pad = A_pad - action_size
    return {
        "w1": params["w1"].astype(jnp.bfloat16),
        "b1": params["b1"].astype(jnp.float32),
        "w2": params["w2"].astype(jnp.bfloat16),
        "b2": params["b2"].astype(jnp.float32),
        "w3": jnp.pad(params["w3"], ((0, 0), (0, pad))).astype(jnp.bfloat16),
        "b3": jnp.pad(params["b3"], ((0, 0), (0, pad)),
                      constant_values=_NEG_BIG).astype(jnp.float32),
    }


def reference_forward_f32(state, params):
    """Pure-f32 reference with the original PyTorch-equivalent semantics."""
    h1 = jax.nn.relu(state @ params["w1"] + params["b1"])
    h2 = jax.nn.relu(h1 @ params["w2"] + params["b2"])
    logits = h2 @ params["w3"] + params["b3"]
    return jax.nn.softmax(logits, axis=1)


def reference_forward_bf16(state, kparams, action_size):
    """Reference with matching bf16 quantization of weights/activations (f32 accumulation)."""
    x = state.astype(jnp.bfloat16)
    h1 = jnp.maximum(
        jnp.dot(x, kparams["w1"], preferred_element_type=jnp.float32) + kparams["b1"], 0.0
    ).astype(jnp.bfloat16)
    h2 = jnp.maximum(
        jnp.dot(h1, kparams["w2"], preferred_element_type=jnp.float32) + kparams["b2"], 0.0
    ).astype(jnp.bfloat16)
    logits = jnp.dot(h2, kparams["w3"], preferred_element_type=jnp.float32) + kparams["b3"]
    return jax.nn.softmax(logits, axis=1)[:, :action_size]


if __name__ == "__main__":
    STATE, ACTION = 16, 4                   # hidden = 8 * STATE = 128
    key = jax.random.PRNGKey(0)
    key, kx = jax.random.split(key)
    params = init_params(key, STATE, ACTION)
    kparams = prepare_kernel_params(params, ACTION)

    # NOTE: tolerances are deliberately relaxed vs. the previous revision to cover the
    # bf16 quantization of the output probabilities (~2e-3 absolute).

    # --- small single-tile case (B=8, grid=(1,)) ---
    B = 8
    state = jax.random.normal(kx, (B, STATE), jnp.float32)
    probs = jax.block_until_ready(policy_network_forward(state, kparams, ACTION))
    assert probs.shape == (B, ACTION) and probs.dtype == jnp.float32
    ref_bf16 = reference_forward_bf16(state, kparams, ACTION)
    ref_f32 = reference_forward_f32(state, params)
    assert jnp.allclose(probs, ref_bf16, atol=1e-2, rtol=1e-2)
    assert jnp.allclose(probs, ref_f32, atol=3e-2, rtol=3e-2)
    assert jnp.allclose(jnp.sum(probs, axis=1), 1.0, atol=1e-2)

    # --- multi-tile case with a partial last block (B=40, TB=16 -> grid=(3,), last block 8 rows) ---
    key, kx2 = jax.random.split(key)
    B2 = 40
    state2 = jax.random.normal(kx2, (B2, STATE), jnp.float32)
    probs2 = jax.block_until_ready(
        policy_network_forward(state2, kparams, ACTION, block_b=16))
    assert probs2.shape == (B2, ACTION)
    ref2 = reference_forward_bf16(state2, kparams, ACTION)
    assert jnp.allclose(probs2, ref2, atol=1e-2, rtol=1e-2)
    assert jnp.allclose(jnp.sum(probs2, axis=1), 1.0, atol=1e-2)

    # --- default large-tile path: exercises the ">=2 grid steps" cap (TB=32, grid=(2,)) ---
    probs3 = jax.block_until_ready(policy_network_forward(state2, kparams, ACTION))
    assert probs3.shape == (B2, ACTION)
    assert jnp.allclose(probs3, ref2, atol=1e-2, rtol=1e-2)
    assert jnp.allclose(jnp.sum(probs3, axis=1), 1.0, atol=1e-2)

    print("KERNEL_OK")
</pallas_src>

<mosaic_0001>
module attributes {stable_mosaic.version = 11 : i64} {
  func.func @policy_kernel(%arg0: i32, %arg1: memref<8x16xf32, #tpu.memory_space<vmem>>, %arg2: memref<16x128xbf16, #tpu.memory_space<vmem>>, %arg3: memref<1x128xf32, #tpu.memory_space<vmem>>, %arg4: memref<128x128xbf16, #tpu.memory_space<vmem>>, %arg5: memref<1x128xf32, #tpu.memory_space<vmem>>, %arg6: memref<128x128xbf16, #tpu.memory_space<vmem>>, %arg7: memref<1x128xf32, #tpu.memory_space<vmem>>, %arg8: memref<8x128xbf16, #tpu.memory_space<vmem>>) attributes {dimension_semantics = [#tpu.dimension_semantics<parallel>], iteration_bounds = array<i64: 1>, scalar_prefetch = 0 : i64, scratch_operands = 0 : i64, tpu.core_type = #tpu.core_type<tc>, window_params = [{transform_indices = @transform_0, window_bounds = array<i64: 8, 16>}, {pipeline_mode = #tpu.pipeline_mode<synchronous>, transform_indices = @transform_1, window_bounds = array<i64: 16, 128>}, {pipeline_mode = #tpu.pipeline_mode<synchronous>, transform_indices = @transform_2, window_bounds = array<i64: 1, 128>}, {pipeline_mode = #tpu.pipeline_mode<synchronous>, transform_indices = @transform_3, window_bounds = array<i64: 128, 128>}, {pipeline_mode = #tpu.pipeline_mode<synchronous>, transform_indices = @transform_4, window_bounds = array<i64: 1, 128>}, {pipeline_mode = #tpu.pipeline_mode<synchronous>, transform_indices = @transform_5, window_bounds = array<i64: 128, 128>}, {pipeline_mode = #tpu.pipeline_mode<synchronous>, transform_indices = @transform_6, window_bounds = array<i64: 1, 128>}, {transform_indices = @transform_7, window_bounds = array<i64: 8, 128>}]} {
    %c0 = arith.constant 0 : index
    %c0_0 = arith.constant 0 : index
    %0 = vector.load %arg1[%c0, %c0_0] : memref<8x16xf32, #tpu.memory_space<vmem>>, vector<8x16xf32>
    %1 = arith.truncf %0 : vector<8x16xf32> to vector<8x16xbf16>
    %c0_1 = arith.constant 0 : index
    %c0_2 = arith.constant 0 : index
    %2 = vector.load %arg2[%c0_1, %c0_2] : memref<16x128xbf16, #tpu.memory_space<vmem>>, vector<16x128xbf16>
    %cst = arith.constant dense<0.000000e+00> : vector<8x128xf32>
    %3 = tpu.matmul %1, %2, %cst {dimension_numbers = #tpu.dot_dimension_numbers<[1], [0], [0], [1], [0, 0, 1, 1], [], []>} : vector<8x16xbf16>, vector<16x128xbf16>, vector<8x128xf32> -> vector<8x128xf32>
    %c0_3 = arith.constant 0 : index
    %c0_4 = arith.constant 0 : index
    %4 = vector.load %arg3[%c0_3, %c0_4] : memref<1x128xf32, #tpu.memory_space<vmem>>, vector<1x128xf32>
    %5 = vector.broadcast %4 : vector<1x128xf32> to vector<8x128xf32>
    %6 = arith.addf %3, %5 : vector<8x128xf32>
    %cst_5 = arith.constant 0.000000e+00 : f32
    %7 = vector.broadcast %cst_5 : f32 to vector<8x128xf32>
    %8 = arith.maximumf %6, %7 : vector<8x128xf32>
    %9 = arith.truncf %8 : vector<8x128xf32> to vector<8x128xbf16>
    %c0_6 = arith.constant 0 : index
    %c0_7 = arith.constant 0 : index
    %10 = vector.load %arg4[%c0_6, %c0_7] : memref<128x128xbf16, #tpu.memory_space<vmem>>, vector<128x128xbf16>
    %cst_8 = arith.constant dense<0.000000e+00> : vector<8x128xf32>
    %11 = tpu.matmul %9, %10, %cst_8 {dimension_numbers = #tpu.dot_dimension_numbers<[1], [0], [0], [1], [0, 0, 1, 1], [], []>} : vector<8x128xbf16>, vector<128x128xbf16>, vector<8x128xf32> -> vector<8x128xf32>
    %c0_9 = arith.constant 0 : index
    %c0_10 = arith.constant 0 : index
    %12 = vector.load %arg5[%c0_9, %c0_10] : memref<1x128xf32, #tpu.memory_space<vmem>>, vector<1x128xf32>
    %13 = vector.broadcast %12 : vector<1x128xf32> to vector<8x128xf32>
    %14 = arith.addf %11, %13 : vector<8x128xf32>
    %cst_11 = arith.constant 0.000000e+00 : f32
    %15 = vector.broadcast %cst_11 : f32 to vector<8x128xf32>
    %16 = arith.maximumf %14, %15 : vector<8x128xf32>
    %17 = arith.truncf %16 : vector<8x128xf32> to vector<8x128xbf16>
    %c0_12 = arith.constant 0 : index
    %c0_13 = arith.constant 0 : index
    %18 = vector.load %arg6[%c0_12, %c0_13] : memref<128x128xbf16, #tpu.memory_space<vmem>>, vector<128x128xbf16>
    %cst_14 = arith.constant dense<0.000000e+00> : vector<8x128xf32>
    %19 = tpu.matmul %17, %18, %cst_14 {dimension_numbers = #tpu.dot_dimension_numbers<[1], [0], [0], [1], [0, 0, 1, 1], [], []>} : vector<8x128xbf16>, vector<128x128xbf16>, vector<8x128xf32> -> vector<8x128xf32>
    %c0_15 = arith.constant 0 : index
    %c0_16 = arith.constant 0 : index
    %20 = vector.load %arg7[%c0_15, %c0_16] : memref<1x128xf32, #tpu.memory_space<vmem>>, vector<1x128xf32>
    %21 = vector.broadcast %20 : vector<1x128xf32> to vector<8x128xf32>
    %22 = arith.addf %19, %21 : vector<8x128xf32>
    %cst_17 = arith.constant dense<0xFF800000> : vector<8xf32>
    %23 = vector.multi_reduction <maximumf>, %22, %cst_17 [1] : vector<8x128xf32> to vector<8xf32>
    %24 = vector.shape_cast %23 : vector<8xf32> to vector<8x1xf32>
    %25 = vector.broadcast %24 : vector<8x1xf32> to vector<8x128xf32>
    %26 = arith.subf %22, %25 : vector<8x128xf32>
    %27 = math.exp %26 : vector<8x128xf32>
    %cst_18 = arith.constant dense<0.000000e+00> : vector<8xf32>
    %28 = vector.multi_reduction <add>, %27, %cst_18 [1] : vector<8x128xf32> to vector<8xf32>
    %29 = vector.shape_cast %28 : vector<8xf32> to vector<8x1xf32>
    %30 = vector.broadcast %29 : vector<8x1xf32> to vector<8x128xf32>
    %31 = arith.divf %27, %30 : vector<8x128xf32>
    %32 = arith.truncf %31 : vector<8x128xf32> to vector<8x128xbf16>
    %c0_19 = arith.constant 0 : index
    %c0_20 = arith.constant 0 : index
    %33 = vector.load %arg8[%c0_19, %c0_20] : memref<8x128xbf16, #tpu.memory_space<vmem>>, vector<8x128xbf16>
    tpu.vector_store %arg8[%c0_19, %c0_20], %32 {strides = array<i32>} : memref<8x128xbf16, #tpu.memory_space<vmem>>, vector<8x128xbf16>,
    return
  }
  func.func @transform_0(%arg0: i32) -> (i32, i32) {
    %c0_i32 = arith.constant 0 : i32
    %c0_i32_0 = arith.constant 0 : i32
    return %arg0, %c0_i32 : i32, i32
  }
  func.func @transform_1(%arg0: i32) -> (i32, i32) {
    %c0_i32 = arith.constant 0 : i32
    %c0_i32_0 = arith.constant 0 : i32
    %c0_i32_1 = arith.constant 0 : i32
    return %c0_i32, %c0_i32_0 : i32, i32
  }
  func.func @transform_2(%arg0: i32) -> (i32, i32) {
    %c0_i32 = arith.constant 0 : i32
    %c0_i32_0 = arith.constant 0 : i32
    %c0_i32_1 = arith.constant 0 : i32
    return %c0_i32, %c0_i32_0 : i32, i32
  }
  func.func @transform_3(%arg0: i32) -> (i32, i32) {
    %c0_i32 = arith.constant 0 : i32
    %c0_i32_0 = arith.constant 0 : i32
    %c0_i32_1 = arith.constant 0 : i32
    return %c0_i32, %c0_i32_0 : i32, i32
  }
  func.func @transform_4(%arg0: i32) -> (i32, i32) {
    %c0_i32 = arith.constant 0 : i32
    %c0_i32_0 = arith.constant 0 : i32
    %c0_i32_1 = arith.constant 0 : i32
    return %c0_i32, %c0_i32_0 : i32, i32
  }
  func.func @transform_5(%arg0: i32) -> (i32, i32) {
    %c0_i32 = arith.constant 0 : i32
    %c0_i32_0 = arith.constant 0 : i32
    %c0_i32_1 = arith.constant 0 : i32
    return %c0_i32, %c0_i32_0 : i32, i32
  }
  func.func @transform_6(%arg0: i32) -> (i32, i32) {
    %c0_i32 = arith.constant 0 : i32
    %c0_i32_0 = arith.constant 0 : i32
    %c0_i32_1 = arith.constant 0 : i32
    return %c0_i32, %c0_i32_0 : i32, i32
  }
  func.func @transform_7(%arg0: i32) -> (i32, i32) {
    %c0_i32 = arith.constant 0 : i32
    %c0_i32_0 = arith.constant 0 : i32
    return %arg0, %c0_i32 : i32, i32
  }
}

</mosaic_0001>

<bundles_post_ra>
// kernel: tpu_custom_call.1
= control target key start
LH: loop header
LB: loop body
LE: loop exit
PB: predicated region body
PF: predicated region fallthrough
CT: control target
= control target key end

     0   :  { %12 = vsyncpa [#allocation3], 0  ;;  %s723_s0 = inlined_call_operand.hbm [shape: f32[8,16], index: 0, kind: input, shape index: {}]   ;;  %s724_s1 = inlined_call_operand.hbm [shape: bf16[16,128], index: 1, kind: input, shape index: {}]   ;;  %s725_s2 = inlined_call_operand.vmem [shape: f32[1,128], index: 2, kind: input, shape index: {}]   ;;  %s726_s3 = inlined_call_operand.hbm [shape: bf16[128,128], index: 3, kind: input, shape index: {}]   ;;  %s727_s4 = inlined_call_operand.vmem [shape: f32[1,128], index: 4, kind: input, shape index: {}]   ;;  %s728_s5 = inlined_call_operand.hbm [shape: bf16[128,128], index: 5, kind: input, shape index: {}]   ;;  %s729_s6 = inlined_call_operand.vmem [shape: f32[1,128], index: 6, kind: input, shape index: {}]   ;;  %s730_s7 = inlined_call_operand.hbm [shape: bf16[8,128], index: 7, kind: output, shape index: {}]  }
   0x1   :  { %13 = vsyncpa [#allocation6], 0 }
   0x2   :  { %14 = vsyncpa [#allocation9], 0 }
   0x3   :  { %15 = vsyncpa [#allocation4], 0  ;;  %s621_s24 = smov [#allocation5]  }
   0x4   :  { %s31_s25 = sshll.u32 %s621_s24, 4  ;;  %s32_s25 = int_to_ptr.vmem [resolvable:$true] %s31_s25 }
   0x5   :  { %s521_s26 = scalar_lea.vmem %s32_s25, 128  ;;  %p526_p1 = scmp.lt.s32.totalorder %s32_s25, %s32_s25 }
   0x6   :  { %p522_p0 = scmp.ne.s32.totalorder %s32_s25, %s521_s26  ;;  %p527_p2 = scmp.lt.s32.totalorder %s521_s26, %s521_s26 }
   0x8   :  { %p528_p3 = por %p527_p2, %p526_p1 }
   0xa   :  { %p529_p4 = pnand %p528_p3, %p522_p0 }
   0xc   :  { %532 = shalt.err (!%p529_p4)
}
   0xd   :  { %s622_s27 = smov 64   ;;  %s623_s28 = smov 4  }
   0xe   :  { %37 = dma.hbm_to_vmem [thread:$0]  %s724_s1, 128, %s32_s25, [#allocation6], %s622_s27, %s622_s27, %s623_s28  }
   0xf   :  { %s624_s8 = smov [#allocation2]   ;;  %s625_s10 = smov [#allocation7]  }
  0x10   :  { %s22_s9 = sshll.u32 %s624_s8, 4  ;;  %s45_s11 = sshll.u32 %s625_s10, 4  ;;  %s23_s9 = int_to_ptr.vmem [resolvable:$true] %s22_s9  ;;  %s46_s11 = int_to_ptr.vmem [resolvable:$true] %s45_s11 }
  0x11   :  { %s541_s12 = scalar_lea.vmem %s23_s9, 128  ;;  %p546_p6 = scmp.lt.s32.totalorder %s23_s9, %s23_s9 }
  0x12   :  { %p542_p5 = scmp.ne.s32.totalorder %s23_s9, %s541_s12  ;;  %p547_p7 = scmp.lt.s32.totalorder %s541_s12, %s541_s12 }
  0x14   :  { %p548_p8 = por %p547_p7, %p546_p6 }
  0x16   :  { %p549_p9 = pnand %p548_p8, %p542_p5 }
  0x18   :  { %552 = shalt.err (!%p549_p9)
}
  0x19   :  { %25 = dma.hbm_to_vmem [thread:$0]  %s723_s0, 128, %s23_s9, [#allocation3]  }
  0x1a   :  { %s561_s15 = scalar_lea.vmem %s46_s11, 1024  ;;  %p566_p11 = scmp.lt.s32.totalorder %s46_s11, %s46_s11 }
  0x1b   :  { %p562_p10 = scmp.ne.s32.totalorder %s46_s11, %s561_s15  ;;  %p567_p12 = scmp.lt.s32.totalorder %s561_s15, %s561_s15 }
  0x1d   :  { %p568_p13 = por %p567_p12, %p566_p11 }
  0x1f   :  { %p569_p0 = pnand %p568_p13, %p562_p10 }
  0x21   :  { %572 = shalt.err (!%p569_p0)
}
  0x22   :  { %51 = dma.hbm_to_vmem [thread:$0]  %s726_s3, 1024, %s46_s11, [#allocation6], %s622_s27, %s622_s27, %s623_s28  }
  0x23   :  { %s626_s17 = smov [#allocation8]  }
  0x24   :  { %s59_s18 = sshll.u32 %s626_s17, 4  ;;  %s60_s18 = int_to_ptr.vmem [resolvable:$true] %s59_s18 }
  0x25   :  { %s581_s19 = scalar_lea.vmem %s60_s18, 1024  ;;  %p586_p2 = scmp.lt.s32.totalorder %s60_s18, %s60_s18 }
  0x26   :  { %p582_p1 = scmp.ne.s32.totalorder %s60_s18, %s581_s19  ;;  %p587_p3 = scmp.lt.s32.totalorder %s581_s19, %s581_s19 }
  0x28   :  { %p588_p4 = por %p587_p3, %p586_p2 }
  0x2a   :  { %p589_p5 = pnand %p588_p4, %p582_p1 }
  0x2c   :  { %592 = shalt.err (!%p589_p5)
}
  0x2d   :  { %65 = dma.hbm_to_vmem [thread:$0]  %s728_s5, 1024, %s60_s18, [#allocation9], %s622_s27, %s622_s27, %s623_s28  }
  0x2e   :  { %613 = dma.done.wait [#allocation3], 128  }
  0x2f   :  { %614 = vsyncadd [#allocation3], 4294967168 }
  0x30   :  { %615 = dma.done.wait [#allocation6], 1152  }
  0x31   :  { %616 = vsyncadd [#allocation6], 4294966144 }
  0x32   :  { %617 = dma.done.wait [#allocation9], 1024  }
  0x33   :  { %618 = vsyncadd [#allocation9], 4294966272  ;;  %v627_v0 = vmov 0.0   ;;  %vm628_vm0 = vmmov 0   ;;  %v492_v1 = vld [vmem:[#allocation5] sm:$0xff]   ;;  %v81_v2 = vld [vmem:[#allocation2] sm:$0xff] }
  0x34   :  { %437 = vmatprep.subr.bf16.mxu0 %v627_v0  ;;  %439 = vmatprep.mubr.msk.bf16.mxu0 %vm628_vm0, %v627_v0  ;;  %v82_v3 = vpack.c.bf16 %v81_v2, %v81_v2  ;;  %vm98_vm1 = vcmask 130048   ;;  %v493_v4 = vld [vmem:[#allocation7 + $0x38] sm:$0xff]   ;;  %v494_v5 = vld [vmem:[#allocation7 + $0x30] sm:$0xff]   ;;  %v495_v6 = vld [vmem:[#allocation7 + $0x28] sm:$0xff]  }
  0x35   :  { %443 = vmatprep.subr.bf16.mxu1 %v627_v0  ;;  %459 = vmatprep.mubr.msk.bf16.mxu1 %vm628_vm0, %v627_v0  ;;  %v496_v7 = vld [vmem:[#allocation7 + $0x20] sm:$0xff]   ;;  %v497_v8 = vld [vmem:[#allocation7 + $0x18] sm:$0xff]   ;;  %v498_v9 = vld [vmem:[#allocation7 + $0x10] sm:$0xff]  }
  0x36   :  { %438 = vmatpush3.bf16.msra.mxu0 %v492_v1  ;;  %444 = vmatpush3.bf16.msra.mxu1 %v493_v4  ;;  %v499_v10 = vld [vmem:[#allocation7 + $0x8] sm:$0xff]   ;;  %v500_v11 = vld [vmem:[#allocation7] sm:$0xff]   ;;  %v501_v12 = vld [vmem:[#allocation8 + $0x38] sm:$0xff]  }
  0x37   :  { %463 = vmatprep.subr.bf16.mxu0 %v627_v0  ;;  %445 = vmatprep.subr.bf16.mxu1 %v627_v0  ;;  %v502_v13 = vld [vmem:[#allocation8 + $0x30] sm:$0xff]   ;;  %v503_v14 = vld [vmem:[#allocation8 + $0x28] sm:$0xff]   ;;  %v504_v15 = vld [vmem:[#allocation8 + $0x20] sm:$0xff]  }
  0x38   :  { %v505_v16 = vld [vmem:[#allocation8 + $0x18] sm:$0xff]   ;;  %v506_v17 = vld [vmem:[#allocation8 + $0x10] sm:$0xff]   ;;  %v507_v26 = vld [vmem:[#allocation8 + $0x8] sm:$0xff]  }
  0x39   :  { %440 = vmatmul.mubr.msk.bf16.vlgmr.msra.gmra.mxu0 %vm98_vm1, %v82_v3  ;;  %v396_v18 = vld [vmem:[%s725_s2] ss:$0 sm:$0xff]  ;;  %v508_v27 = vld [vmem:[#allocation8] sm:$0xff]  }
  0x3a   :  { %479 = vmatprep.mubr.msk.bf16.mxu0 %vm628_vm0, %v627_v0  ;;  %446 = vmatpush3.bf16.msra.mxu1 %v494_v5  ;;  %v399_v28 = vld [vmem:[%s727_s4] ss:$0 sm:$0xff]  ;;  %s629_s4 = smov [#allocation10]  }
  0x3b   :  { %447 = vmatprep.subr.bf16.mxu1 %v627_v0  ;;  %464 = vmatpush3.bf16.msra.mxu0 %v501_v12  ;;  %v408_v36 = vld [vmem:[%s729_s6] ss:$0 sm:$0xff]  ;;  %s385_s24 = sshll.u32 %s629_s4, 4  ;;  %s386_s24 = int_to_ptr.vmem [resolvable:$true] %s385_s24 }
  0x3c   :  { %465 = vmatprep.subr.bf16.mxu0 %v627_v0  ;;  %s593_s6 = scalar_lea.vmem %s386_s24, 64  ;;  %p598_p7 = scmp.lt.s32.totalorder %s386_s24, %s386_s24 }
  0x3d   :  { %p594_p6 = scmp.ne.s32.totalorder %s386_s24, %s593_s6  ;;  %p599_p8 = scmp.lt.s32.totalorder %s593_s6, %s593_s6 }
  0x3e   :  { %448 = vmatpush3.bf16.msra.mxu1 %v495_v6 }
  0x3f   :  { %449 = vmatprep.subr.bf16.mxu1 %v627_v0  ;;  %466 = vmatpush3.bf16.msra.mxu0 %v502_v13  ;;  %p600_p9 = por %p599_p8, %p598_p7 }
  0x40   :  { %467 = vmatprep.subr.bf16.mxu0 %v627_v0 }
  0x41   :  { %p601_p10 = pnand %p600_p9, %p594_p6 }
  0x42   :  { %450 = vmatpush3.bf16.msra.mxu1 %v496_v7 }
  0x43   :  { %451 = vmatprep.subr.bf16.mxu1 %v627_v0  ;;  %468 = vmatpush3.bf16.msra.mxu0 %v503_v14 }
  0x44   :  { %469 = vmatprep.subr.bf16.mxu0 %v627_v0 }
  0x46   :  { %452 = vmatpush3.bf16.msra.mxu1 %v497_v8 }
  0x47   :  { %453 = vmatprep.subr.bf16.mxu1 %v627_v0  ;;  %470 = vmatpush3.bf16.msra.mxu0 %v504_v15 }
  0x48   :  { %471 = vmatprep.subr.bf16.mxu0 %v627_v0 }
  0x4a   :  { %454 = vmatpush3.bf16.msra.mxu1 %v498_v9 }
  0x4b   :  { %455 = vmatprep.subr.bf16.mxu1 %v627_v0  ;;  %472 = vmatpush3.bf16.msra.mxu0 %v505_v16 }
  0x4c   :  { %473 = vmatprep.subr.bf16.mxu0 %v627_v0 }
  0x4e   :  { %456 = vmatpush3.bf16.msra.mxu1 %v499_v10 }
  0x4f   :  { %457 = vmatprep.subr.bf16.mxu1 %v627_v0  ;;  %474 = vmatpush3.bf16.msra.mxu0 %v506_v17 }
  0x50   :  { %475 = vmatprep.subr.bf16.mxu0 %v627_v0 }
  0x52   :  { %458 = vmatpush3.bf16.msra.mxu1 %v500_v11 }
  0x53   :  { %476 = vmatpush3.bf16.msra.mxu0 %v507_v26 }
  0x54   :  { %477 = vmatprep.subr.bf16.mxu0 %v627_v0 }
  0x57   :  { %478 = vmatpush3.bf16.msra.mxu0 %v508_v27 }
  0xf9   :  { %v136_v19 = vpop.f32.mrf.mxu0 }
  0xfa   :  { %v137_v20 = vadd.f32 %v396_v18, %v136_v19 }
  0xfb   :  { %v441_v21 = vpop.f32.mrf.mxu0 }
  0xfc   :  { %v142_v22 = vmax.f32 %v137_v20, 0.0 }
  0xfd   :  { %v139_v23 = vpop.f32.mrf.mxu0 }
  0xfe   :  { %v143_v24 = vpack.c.bf16 %v142_v22, %v142_v22 }
  0xff   :  { %v442_v25 = vpop.f32.mrf.mxu0 }
 0x100   :  { %460 = vmatmul.mubr.bf16.vlgmr.msra.gmra.mxu1 %v143_v24 }
 0x1c0   :  { %v249_v29 = vpop.f32.mrf.mxu1 }
 0x1c1   :  { %v250_v30 = vadd.f32 %v399_v28, %v249_v29 }
 0x1c2   :  { %v461_v31 = vpop.f32.mrf.mxu1 }
 0x1c3   :  { %v255_v32 = vmax.f32 %v250_v30, 0.0 }
 0x1c4   :  { %v252_v33 = vpop.f32.mrf.mxu1 }
 0x1c5   :  { %v256_v34 = vpack.c.bf16 %v255_v32, %v255_v32 }
 0x1c6   :  { %v462_v35 = vpop.f32.mrf.mxu1 }
 0x1c7   :  { %480 = vmatmul.mubr.bf16.vlgmr.msra.gmra.mxu0 %v256_v34 }
 0x287   :  { %v362_v37 = vpop.f32.mrf.mxu0 }
 0x288   :  { %v363_v38 = vadd.f32 %v408_v36, %v362_v37 }
 0x289   :  { %v481_v39 = vpop.f32.mrf.mxu0 }
 0x28a   :  { %368 = vmax.xlane.f32.xlu0 %v363_v38 }
 0x28b   :  { %v365_v40 = vpop.f32.mrf.mxu0 }
 0x28d   :  { %v482_v41 = vpop.f32.mrf.mxu0 }
 0x313   :  { %v369_v42 = vpop.xlane.xlu0 %368 }
 0x314   :  { %v370_v43 = vsub.f32 %v363_v38, %v369_v42 }
 0x316   :  { %v371_v44 = vmul.f32 1.442695, %v370_v43 }
 0x318   :  { %509 = vpow2.f32 %v371_v44 }
 0x325   :  { %v510_v45 = vpop.eup %509 }
 0x326   :  { %373 = vadd.xlane.f32.xlu0 %v510_v45 }
 0x3af   :  { %v374_v46 = vpop.xlane.xlu0 %373 }
 0x3b0   :  { %511 = vrcp.f32 %v374_v46 }
 0x3bd   :  { %v512_v47 = vpop.eup %511 }
 0x3be   :  { %v376_v48 = vmul.f32 %v512_v47, %v510_v45 }
 0x3c0   :  { %v377_v49 = vpack.c.bf16 %v376_v48, %v376_v48 }
 0x3c2   :  { %378 = vst [vmem:[#allocation10] sm:$0xf] %v377_v49 }
 0x3c3   :  { %604 = shalt.err (!%p601_p10)
}
 0x3c4   :  { %388 = dma.vmem_to_hbm [thread:$0]  %s386_s24, 64, %s730_s7, [#allocation4]  }
 0x3c5   :  { %619 = dma.done.wait [#allocation4], 64  }
 0x3c6   :  { %620 = vsyncadd [#allocation4], 4294967232 }
 0x3c7   :  { %392 = vsyncpa [#allocation3], 1 }
 0x3c8   :  { %393 = vsyncpa [#allocation6], 1 }
 0x3c9   :  { %394 = vsyncpa [#allocation9], 1 }
 0x3ca   :  { %395 = vsyncpa [#allocation4], 1 }

</bundles_post_ra>
